<compile_context>
chip_gen: v5e
topology: v5e:2x2
jax: 0.10.0
libtpu: 0.0.40
codegen_flags: <defaults>
</compile_context>

<pallas_src>
import jax
import jax.numpy as jnp
from jax.experimental import pallas as pl
from jax.experimental.pallas import tpu as pltpu


def _round_up(n, m):
    return ((n + m - 1) // m) * m


def probe_kernel(x_ref, w1_ref, b1_ref, w2_ref, b2_ref, w3_ref, b3_ref, o_ref):
    # Layer 1: Linear(2E -> E) + ReLU.  bf16 cast happens here (not in HBM);
    # MXU accumulates in f32, bias/ReLU run on the f32 accumulator.
    xb = x_ref[...].astype(jnp.bfloat16)
    h1 = jnp.dot(xb, w1_ref[...], preferred_element_type=jnp.float32)
    h1 = jnp.maximum(h1 + b1_ref[...], 0.0)

    # Layer 2: Linear(E -> E) + ReLU.
    h2 = jnp.dot(h1.astype(jnp.bfloat16), w2_ref[...],
                 preferred_element_type=jnp.float32)
    h2 = jnp.maximum(h2 + b2_ref[...], 0.0)

    # Layer 3: Linear(E -> 1) computed lane-dense.  w3 is stored padded to
    # (8, E) (row 0 = real weights, rows 1..7 = 0).  Contract both operands on
    # their last dim (the flash-attention q@k^T pattern) so the batch lands on
    # the lane axis: (8, E) x (tb, E) -> (8, tb).  Row 0 is the probe logit.
    z_full = jax.lax.dot_general(
        w3_ref[...], h2.astype(jnp.bfloat16),
        dimension_numbers=(((1,), (1,)), ((), ())),
        preferred_element_type=jnp.float32)
    z = z_full[0:1, :] + b3_ref[...]            # (1, tb), b3 broadcasts

    # Sigmoid on the f32 row (exp lands on the otherwise-idle EUP);
    # unmasked lane-dense store.
    o_ref[...] = jax.nn.sigmoid(z).astype(o_ref.dtype)


def probe_forward(x, params, *, tile_b=8192):
    """x: (B, 2E) float32.  params: kernel-format params from init_params."""
    B, twoE = x.shape
    E = twoE // 2

    # Adaptive batch tile: big enough to amortize per-step overhead, but the
    # streamed f32 x block stays <= ~4 MiB so (double-buffered x) + resident
    # weights + f32 activations fit any generation's VMEM (v7x: 64 MiB phys).
    max_tb = max(512, (4 * 1024 * 1024) // (twoE * 4))
    max_tb = max(128, (max_tb // 128) * 128)
    tb = min(tile_b, max_tb)
    tb = min(tb, _round_up(B, 8))       # tiny batches: one small tile
    tb = _round_up(tb, 8)               # f32 sublane alignment
    num_tiles = pl.cdiv(B, tb)
    grid = (num_tiles,)

    w1, w2, w3 = params["w1"], params["w2"], params["w3"]   # bf16 (cast at init)
    b1, b2, b3 = params["b1"], params["b2"], params["b3"]   # f32

    def const(shape):
        # Resident operand: same block every grid step -> DMA'd once.
        return pl.BlockSpec(shape, lambda i: tuple(0 for _ in shape))

    w_bytes = (w1.size + w2.size + w3.size) * 2 + (b1.size + b2.size + b3.size) * 4
    cost = pl.CostEstimate(
        flops=2 * B * (2 * E * E + E * E + 8 * E),
        transcendentals=B,
        bytes_accessed=B * twoE * 4 + w_bytes + num_tiles * tb * 4,
    )

    out = pl.pallas_call(
        probe_kernel,
        # Lane-dense output: one (1, tb) row per grid step.
        out_shape=jax.ShapeDtypeStruct((num_tiles, 1, tb), jnp.float32),
        grid=grid,
        in_specs=[
            pl.BlockSpec((tb, twoE), lambda i: (i, 0)),   # x streamed over batch
            const(w1.shape),
            const(b1.shape),
            const(w2.shape),
            const(b2.shape),
            const(w3.shape),
            const(b3.shape),
        ],
        out_specs=pl.BlockSpec((None, 1, tb), lambda i: (i, 0, 0)),
        compiler_params=pltpu.CompilerParams(
            # "parallel" batch axis -> megacore sharding on v7x when grid >= 2.
            dimension_semantics=("parallel",),
            vmem_limit_bytes=48 * 1024 * 1024,            # v7x-safe (<64 MiB)
        ),
        cost_estimate=cost,
    )(x, w1, b1, w2, b2, w3, b3)

    # Drop the (garbage) rows computed for the padded tail of the last tile.
    return out.reshape(-1)[:B].reshape(B, 1)


def init_params(embedding_dim, key):
    """Deterministic init mimicking PyTorch Linear (uniform +/- 1/sqrt(fan_in)).

    Weights for layers 1/2 are stored pre-transposed as (in, out) and cast to
    bf16 once here (not per call).  w3 is stored as an (8, E) bf16 slab whose
    row 0 is the PyTorch (1, E) weight row (rows 1..7 are zero padding for the
    MXU), and b3 is a (1, 1) f32 scalar.
    """
    E = embedding_dim
    ks = jax.random.split(key, 6)

    def lin(kw, kb, fan_in, fan_out, w_shape):
        bound = 1.0 / jnp.sqrt(jnp.float32(fan_in))
        w = jax.random.uniform(kw, w_shape, jnp.float32, -bound, bound)
        b = jax.random.uniform(kb, (1, fan_out), jnp.float32, -bound, bound)
        return w, b

    w1, b1 = lin(ks[0], ks[1], 2 * E, E, (2 * E, E))
    w2, b2 = lin(ks[2], ks[3], E, E, (E, E))
    w3_row, b3 = lin(ks[4], ks[5], E, 1, (1, E))    # PyTorch layout (out=1, in=E)
    w3 = jnp.zeros((8, E), jnp.float32).at[0].set(w3_row[0])

    return {
        "w1": w1.astype(jnp.bfloat16),
        "w2": w2.astype(jnp.bfloat16),
        "w3": w3.astype(jnp.bfloat16),
        "b1": b1,
        "b2": b2,
        "b3": b3.reshape(1, 1),
    }


def probe_ref(x, p):
    """Plain-JAX reference mirroring the kernel's bf16-operand / f32-accumulate math."""
    f32 = jnp.float32
    xb = x.astype(jnp.bfloat16).astype(f32)
    w1 = p["w1"].astype(f32)
    w2 = p["w2"].astype(f32)
    w3 = p["w3"][0:1].astype(f32)                    # (1, E) real weights
    h1 = jnp.maximum(xb @ w1 + p["b1"], 0.0)
    h1 = h1.astype(jnp.bfloat16).astype(f32)
    h2 = jnp.maximum(h1 @ w2 + p["b2"], 0.0)
    h2 = h2.astype(jnp.bfloat16).astype(f32)
    z = h2 @ w3.T + p["b3"]
    return jax.nn.sigmoid(z)


if __name__ == "__main__":
    embedding_dim = 32
    batch = 10   # deliberately not a multiple of 8 to exercise the ragged tail

    key = jax.random.PRNGKey(0)
    k_x, k_p = jax.random.split(key)
    x = jax.random.normal(k_x, (batch, 2 * embedding_dim), jnp.float32)
    params = init_params(embedding_dim, k_p)

    out = jax.block_until_ready(probe_forward(x, params))
    ref = probe_ref(x, params)

    assert out.shape == (batch, 1)
    err = float(jnp.max(jnp.abs(out - ref)))
    assert jnp.allclose(out, ref, atol=2e-3, rtol=2e-3), err

    print("KERNEL_OK")
</pallas_src>

<mosaic_0001>
module attributes {stable_mosaic.version = 11 : i64} {
  func.func @probe_kernel(%arg0: i32, %arg1: memref<16x64xf32, #tpu.memory_space<vmem>>, %arg2: memref<64x32xbf16, #tpu.memory_space<vmem>>, %arg3: memref<1x32xf32, #tpu.memory_space<vmem>>, %arg4: memref<32x32xbf16, #tpu.memory_space<vmem>>, %arg5: memref<1x32xf32, #tpu.memory_space<vmem>>, %arg6: memref<8x32xbf16, #tpu.memory_space<vmem>>, %arg7: memref<1x1xf32, #tpu.memory_space<vmem>>, %arg8: memref<1x1x16xf32, #tpu.memory_space<vmem>>) attributes {dimension_semantics = [#tpu.dimension_semantics<parallel>], iteration_bounds = array<i64: 1>, scalar_prefetch = 0 : i64, scratch_operands = 0 : i64, tpu.core_type = #tpu.core_type<tc>, window_params = [{transform_indices = @transform_0, window_bounds = array<i64: 16, 64>}, {pipeline_mode = #tpu.pipeline_mode<synchronous>, transform_indices = @transform_1, window_bounds = array<i64: 64, 32>}, {pipeline_mode = #tpu.pipeline_mode<synchronous>, transform_indices = @transform_2, window_bounds = array<i64: 1, 32>}, {pipeline_mode = #tpu.pipeline_mode<synchronous>, transform_indices = @transform_3, window_bounds = array<i64: 32, 32>}, {pipeline_mode = #tpu.pipeline_mode<synchronous>, transform_indices = @transform_4, window_bounds = array<i64: 1, 32>}, {pipeline_mode = #tpu.pipeline_mode<synchronous>, transform_indices = @transform_5, window_bounds = array<i64: 8, 32>}, {pipeline_mode = #tpu.pipeline_mode<synchronous>, transform_indices = @transform_6, window_bounds = array<i64: 1, 1>}, {transform_indices = @transform_7, window_bounds = array<i64: 1, 1, 16>}]} {
    %c0 = arith.constant 0 : index
    %c0_0 = arith.constant 0 : index
    %0 = vector.load %arg1[%c0, %c0_0] : memref<16x64xf32, #tpu.memory_space<vmem>>, vector<16x64xf32>
    %1 = arith.truncf %0 : vector<16x64xf32> to vector<16x64xbf16>
    %c0_1 = arith.constant 0 : index
    %c0_2 = arith.constant 0 : index
    %2 = vector.load %arg2[%c0_1, %c0_2] : memref<64x32xbf16, #tpu.memory_space<vmem>>, vector<64x32xbf16>
    %cst = arith.constant dense<0.000000e+00> : vector<16x32xf32>
    %3 = tpu.matmul %1, %2, %cst {dimension_numbers = #tpu.dot_dimension_numbers<[1], [0], [0], [1], [0, 0, 1, 1], [], []>} : vector<16x64xbf16>, vector<64x32xbf16>, vector<16x32xf32> -> vector<16x32xf32>
    %c0_3 = arith.constant 0 : index
    %c0_4 = arith.constant 0 : index
    %4 = vector.load %arg3[%c0_3, %c0_4] : memref<1x32xf32, #tpu.memory_space<vmem>>, vector<1x32xf32>
    %5 = vector.broadcast %4 : vector<1x32xf32> to vector<16x32xf32>
    %6 = arith.addf %3, %5 : vector<16x32xf32>
    %cst_5 = arith.constant 0.000000e+00 : f32
    %7 = vector.broadcast %cst_5 : f32 to vector<16x32xf32>
    %8 = arith.maximumf %6, %7 : vector<16x32xf32>
    %9 = arith.truncf %8 : vector<16x32xf32> to vector<16x32xbf16>
    %c0_6 = arith.constant 0 : index
    %c0_7 = arith.constant 0 : index
    %10 = vector.load %arg4[%c0_6, %c0_7] : memref<32x32xbf16, #tpu.memory_space<vmem>>, vector<32x32xbf16>
    %cst_8 = arith.constant dense<0.000000e+00> : vector<16x32xf32>
    %11 = tpu.matmul %9, %10, %cst_8 {dimension_numbers = #tpu.dot_dimension_numbers<[1], [0], [0], [1], [0, 0, 1, 1], [], []>} : vector<16x32xbf16>, vector<32x32xbf16>, vector<16x32xf32> -> vector<16x32xf32>
    %c0_9 = arith.constant 0 : index
    %c0_10 = arith.constant 0 : index
    %12 = vector.load %arg5[%c0_9, %c0_10] : memref<1x32xf32, #tpu.memory_space<vmem>>, vector<1x32xf32>
    %13 = vector.broadcast %12 : vector<1x32xf32> to vector<16x32xf32>
    %14 = arith.addf %11, %13 : vector<16x32xf32>
    %cst_11 = arith.constant 0.000000e+00 : f32
    %15 = vector.broadcast %cst_11 : f32 to vector<16x32xf32>
    %16 = arith.maximumf %14, %15 : vector<16x32xf32>
    %c0_12 = arith.constant 0 : index
    %c0_13 = arith.constant 0 : index
    %17 = vector.load %arg6[%c0_12, %c0_13] : memref<8x32xbf16, #tpu.memory_space<vmem>>, vector<8x32xbf16>
    %18 = arith.truncf %16 : vector<16x32xf32> to vector<16x32xbf16>
    %cst_14 = arith.constant dense<0.000000e+00> : vector<8x16xf32>
    %19 = tpu.matmul %17, %18, %cst_14 {dimension_numbers = #tpu.dot_dimension_numbers<[1], [1], [0], [0], [0, 0, 1, 0], [], []>} : vector<8x32xbf16>, vector<16x32xbf16>, vector<8x16xf32> -> vector<8x16xf32>
    %20 = vector.extract_strided_slice %19 {offsets = [0, 0], sizes = [1, 16], strides = [1, 1]} : vector<8x16xf32> to vector<1x16xf32>
    %c0_15 = arith.constant 0 : index
    %c0_16 = arith.constant 0 : index
    %21 = vector.load %arg7[%c0_15, %c0_16] : memref<1x1xf32, #tpu.memory_space<vmem>>, vector<1x1xf32>
    %22 = vector.broadcast %21 : vector<1x1xf32> to vector<1x16xf32>
    %23 = arith.addf %20, %22 : vector<1x16xf32>
    %24 = arith.negf %23 : vector<1x16xf32>
    %25 = math.exp %24 : vector<1x16xf32>
    %cst_17 = arith.constant 1.000000e+00 : f32
    %26 = vector.broadcast %cst_17 : f32 to vector<1x16xf32>
    %27 = arith.addf %26, %25 : vector<1x16xf32>
    %28 = arith.divf %26, %27 : vector<1x16xf32>
    %c0_18 = arith.constant 0 : index
    %c0_19 = arith.constant 0 : index
    %c0_20 = arith.constant 0 : index
    %29 = vector.load %arg8[%c0_18, %c0_19, %c0_20] : memref<1x1x16xf32, #tpu.memory_space<vmem>>, vector<1x1x16xf32>
    %30 = vector.shape_cast %29 : vector<1x1x16xf32> to vector<1x16xf32>
    %31 = vector.shape_cast %28 : vector<1x16xf32> to vector<1x1x16xf32>
    tpu.vector_store %arg8[%c0_18, %c0_19, %c0_20], %31 {strides = array<i32>} : memref<1x1x16xf32, #tpu.memory_space<vmem>>, vector<1x1x16xf32>,
    return
  }
  func.func @transform_0(%arg0: i32) -> (i32, i32) {
    %c0_i32 = arith.constant 0 : i32
    %c0_i32_0 = arith.constant 0 : i32
    return %arg0, %c0_i32 : i32, i32
  }
  func.func @transform_1(%arg0: i32) -> (i32, i32) {
    %c0_i32 = arith.constant 0 : i32
    %c0_i32_0 = arith.constant 0 : i32
    %c0_i32_1 = arith.constant 0 : i32
    return %c0_i32, %c0_i32_0 : i32, i32
  }
  func.func @transform_2(%arg0: i32) -> (i32, i32) {
    %c0_i32 = arith.constant 0 : i32
    %c0_i32_0 = arith.constant 0 : i32
    %c0_i32_1 = arith.constant 0 : i32
    return %c0_i32, %c0_i32_0 : i32, i32
  }
  func.func @transform_3(%arg0: i32) -> (i32, i32) {
    %c0_i32 = arith.constant 0 : i32
    %c0_i32_0 = arith.constant 0 : i32
    %c0_i32_1 = arith.constant 0 : i32
    return %c0_i32, %c0_i32_0 : i32, i32
  }
  func.func @transform_4(%arg0: i32) -> (i32, i32) {
    %c0_i32 = arith.constant 0 : i32
    %c0_i32_0 = arith.constant 0 : i32
    %c0_i32_1 = arith.constant 0 : i32
    return %c0_i32, %c0_i32_0 : i32, i32
  }
  func.func @transform_5(%arg0: i32) -> (i32, i32) {
    %c0_i32 = arith.constant 0 : i32
    %c0_i32_0 = arith.constant 0 : i32
    %c0_i32_1 = arith.constant 0 : i32
    return %c0_i32, %c0_i32_0 : i32, i32
  }
  func.func @transform_6(%arg0: i32) -> (i32, i32) {
    %c0_i32 = arith.constant 0 : i32
    %c0_i32_0 = arith.constant 0 : i32
    %c0_i32_1 = arith.constant 0 : i32
    return %c0_i32, %c0_i32_0 : i32, i32
  }
  func.func @transform_7(%arg0: i32) -> (i32, i32, i32) {
    %c0_i32 = arith.constant 0 : i32
    %c0_i32_0 = arith.constant 0 : i32
    %c0_i32_1 = arith.constant 0 : i32
    return %arg0, %c0_i32, %c0_i32_0 : i32, i32, i32
  }
}

</mosaic_0001>

<bundles_post_ra>
// kernel: tpu_custom_call.1
= control target key start
LH: loop header
LB: loop body
LE: loop exit
PB: predicated region body
PF: predicated region fallthrough
CT: control target
= control target key end

     0   :  { %s349_s0 = inlined_call_operand.vmem [shape: f32[10,64], index: 0, kind: input, shape index: {}]   ;;  %s350_s1 = inlined_call_operand.vmem [shape: bf16[64,32], index: 1, kind: input, shape index: {}]   ;;  %s351_s2 = inlined_call_operand.vmem [shape: f32[1,32], index: 2, kind: input, shape index: {}]   ;;  %s352_s3 = inlined_call_operand.vmem [shape: bf16[32,32], index: 3, kind: input, shape index: {}]   ;;  %s353_s4 = inlined_call_operand.vmem [shape: f32[1,32], index: 4, kind: input, shape index: {}]   ;;  %s354_s5 = inlined_call_operand.vmem [shape: bf16[8,32], index: 5, kind: input, shape index: {}]   ;;  %s355_s6 = inlined_call_operand.<no memory space> [shape: f32[1,1], index: 6, kind: input, shape index: {}]   ;;  %s356_s7 = inlined_call_operand.hbm [shape: f32[1,1,16], index: 7, kind: output, shape index: {}]  }
   0x1   :  { %v12_v0 = vstv %s355_s6 }
   0x2   :  { %13 = vst [vmem:[#allocation2] sm:$0x1] %v12_v0 }
   0x3   :  { %v227_v1 = vld [vmem:[%s350_s1 + $0x18] sm:$0xff]  ;;  %v226_v2 = vld [vmem:[%s350_s1 + $0x10] sm:$0xff] }
   0x4   :  { %77 = vmatpush.bf16.msra.mxu0 %v227_v1 }
   0x5   :  { %14 = vsyncpa [#allocation4], 0  ;;  %v225_v3 = vld [vmem:[%s350_s1 + $0x8] sm:$0xff]  ;;  %v224_v4 = vld [vmem:[%s350_s1] sm:$0xff]  ;;  %vm69_vm0 = vcmask 523264   ;;  %vm110_vm1 = vcmask 261120  }
   0x6   :  { %v30_v5 = vld [vmem:[%s349_s0] sm:$0xff]  ;;  %v31_v6 = vld [vmem:[%s349_s0 + $0x8] sm:$0xff]  ;;  %v265_v19 = vmov 0   ;;  %s187_s22 = sshll.u32 %s356_s7, 4  ;;  %vm178_vm5 = vcmask 122880   ;;  %s188_s22 = int_to_ptr.hbm [resolvable:$true] %s187_s22 }
   0x7   :  { %v32_v7 = vpack.c.bf16 %v31_v6, %v30_v5  ;;  %v229_v8 = vld [vmem:[%s352_s3 + $0x8] sm:$0xff]  ;;  %v228_v9 = vld [vmem:[%s352_s3] sm:$0xff]  ;;  %232 = vset.pattern.permute.xlu0 %v265_v19 }
   0x8   :  { %78 = vmatpush.bf16.msra.mxu0 %v226_v2  ;;  %120 = vmatpush.bf16.msra.mxu1 %v229_v8  ;;  %v233_v11 = vld [vmem:[%s351_s2] ss:$0 sm:$0xff] }
   0x9   :  { %v151_v18 = vld [vmem:[#allocation2] sm:$0x1] }
   0xa   :  { %154 = vperm.xlu0 %232, %v151_v18   ;;  %v234_v21 = vld [vmem:[%s353_s4] ss:$0 sm:$0xff]  ;;  %s266_s4 = smov [#allocation3]  }
   0xb   :  { %v130_v29 = vld [vmem:[%s354_s5] sm:$0xf]  ;;  %s185_s5 = sshll.u32 %s266_s4, 4  ;;  %s186_s5 = int_to_ptr.vmem [resolvable:$true] %s185_s5 }
   0xc   :  { %79 = vmatpush.bf16.msra.mxu0 %v225_v3  ;;  %121 = vmatpush.bf16.msra.mxu1 %v228_v9 }
  0x10   :  { %80 = vmatpush.bf16.msra.mxu0 %v224_v4 }
  0x13   :  { %212 = vmatmul.msk.bf16.vlgmr.msra.gmra.mxu0 %vm69_vm0, %v32_v7 }
  0x7c   :  { %v155_v30 = vpop.permute.xlu0 %154 }
  0x7d   :  { %v157_v31 = vperm.slane %v155_v30, 0 }
  0x90   :  { %v82_v10 = vpop.f32.mrf.mxu0 }
  0x91   :  { %v83_v12 = vadd.f32 %v233_v11, %v82_v10 }
  0x93   :  { %v87_v15 = vmax.f32 %v83_v12, 0.0 }
  0x98   :  { %v84_v13 = vpop.f32.mrf.mxu0 }
  0x99   :  { %v85_v14 = vadd.f32 %v233_v11, %v84_v13 }
  0x9b   :  { %v88_v16 = vmax.f32 %v85_v14, 0.0 }
  0x9d   :  { %v89_v17 = vpack.c.bf16 %v88_v16, %v87_v15 }
  0x9f   :  { %221 = vmatmul.msk.bf16.vlgmr.msra.gmra.mxu1 %vm110_vm1, %v89_v17 }
 0x11c   :  { %v123_v20 = vpop.f32.mrf.mxu1 }
 0x11d   :  { %v124_v22 = vadd.f32 %v234_v21, %v123_v20 }
 0x11f   :  { %v128_v25 = vmax.f32 %v124_v22, 0.0 }
 0x124   :  { %v125_v23 = vpop.f32.mrf.mxu1 }
 0x125   :  { %v126_v24 = vadd.f32 %v234_v21, %v125_v23 }
 0x127   :  { %v129_v26 = vmax.f32 %v126_v24, 0.0 }
 0x129   :  { %v131_v27 = vpack.c.bf16 %v129_v26, %v128_v25 }
 0x12b   :  { %v136_v28 = vsel %vm110_vm1, %v131_v27, 0 }
 0x12c   :  { %145 = vmatpush.bf16.xpose.msra.mxu2 %v136_v28 }
 0x133   :  { %222 = vmatmul.msk.bf16.vlgmr.msra.gmra.mxu2 %vm110_vm1, %v130_v29 }
 0x1b6   :  { %v147_v32 = vpop.f32.mrf.mxu2 }
 0x1b7   :  { %v158_v33 = vadd.f32 %v157_v31, %v147_v32 }
 0x1b9   :  { %v223_v34 = vmul.f32 -1.442695, %v158_v33 }
 0x1bb   :  { %235 = vpow2.f32 %v223_v34 }
 0x1be   :  { %v149_v35 = vpop.f32.mrf.mxu2 }
 0x1c1   :  { %v236_v36 = vpop.eup %235 }
 0x1c2   :  { %v162_v37 = vadd.f32 1.0, %v236_v36 }
 0x1c4   :  { %237 = vrcp.f32 %v162_v37  ;;  %v174_v41 = vand.u32 2147483648, %v162_v37  ;;  %v172_v43 = vand.u32 2147483647, %v162_v37  ;;  %vm168_vm3 = vweird.f32 %v162_v37 }
 0x1c6   :  { %v175_v45 = vor.u32 1.1754944e-38, %v174_v41  ;;  %vm173_vm6 = vcmp.eq.f32.partialorder %v172_v43, 8.507059e+37 }
 0x1ca   :  { %v238_v38 = vpop.eup %237 }
 0x1cb   :  { %v164_v39 = vmul.f32 %v238_v38, %v162_v37  ;;  %vm169_vm2 = vweird.f32 %v238_v38 }
 0x1cc   :  { %vm170_vm4 = vmor %vm168_vm3, %vm169_vm2 }
 0x1cd   :  { %v165_v40 = vsub.f32 1.0, %v164_v39 }
 0x1cf   :  { %v166_v42 = vmul.f32 %v238_v38, %v165_v40 }
 0x1d1   :  { %v167_v44 = vadd.f32 %v238_v38, %v166_v42 }
 0x1d3   :  { %v171_v46 = vsel %vm170_vm4, %v238_v38, %v167_v44 }
 0x1d4   :  { %v176_v47 = vsel %vm173_vm6, %v175_v45, %v171_v46 }
 0x1d5   :  { %179 = vst.msk [vmem:[#allocation3] sm:$0x1] %vm178_vm5, %v176_v47 }
 0x1d6   :  { %190 = dma.vmem_to_hbm [thread:$0]  %s186_s5, 16, %s188_s22, [#allocation4]  }
 0x1d7   :  { %263 = dma.done.wait [#allocation4], 16  }
 0x1d8   :  { %264 = vsyncadd [#allocation4], 4294967280 }
 0x1d9   :  { %195 = vsyncpa [#allocation4], 1 }

</bundles_post_ra>
